<compile_context>
chip_gen: v7x
topology: tpu7x:2x2x1
jax: 0.10.0
libtpu: 0.0.40
codegen_flags: <defaults>
</compile_context>

<pallas_src>
import jax
import jax.numpy as jnp
from jax.experimental import pallas as pl
from jax.experimental.pallas import tpu as pltpu

_INV_SQRT2 = 0.7071067811865476
_LANE_CANDIDATES = (8192, 4096, 2048, 1024, 512, 256, 128)


def _gelu_kernel(x_ref, o_ref):
    # Exact GELU: x * 0.5 * (1 + erf(x / sqrt(2)))  (matches F.gelu default).
    x = x_ref[...].astype(jnp.float32)
    y = x * (0.5 * (1.0 + jax.lax.erf(x * _INV_SQRT2)))
    o_ref[...] = y.astype(o_ref.dtype)


def _sublane_multiple(dtype) -> int:
    # Minimum row (sublane) tile per element width: f32 -> 8, bf16/f16 -> 16, 8-bit -> 32.
    return {4: 8, 2: 16, 1: 32}.get(jnp.dtype(dtype).itemsize, 8)


def _gelu_2d(x2d: jax.Array, tile_rows: int) -> jax.Array:
    """Run the GELU kernel over a (rows, cols) slab, blocking over rows."""
    rows, cols = x2d.shape
    itemsize = jnp.dtype(x2d.dtype).itemsize
    n = rows * cols
    grid = (pl.cdiv(rows, tile_rows),)

    cost = pl.CostEstimate(
        flops=10 * n,               # erf polynomial + muls/adds (approximate)
        transcendentals=n,
        bytes_accessed=2 * n * itemsize,
    )

    return pl.pallas_call(
        _gelu_kernel,
        out_shape=jax.ShapeDtypeStruct((rows, cols), x2d.dtype),
        grid=grid,
        in_specs=[pl.BlockSpec((tile_rows, cols), lambda i: (i, 0))],
        out_specs=pl.BlockSpec((tile_rows, cols), lambda i: (i, 0)),
        compiler_params=pltpu.CompilerParams(
            dimension_semantics=("parallel",),
            vmem_limit_bytes=32 * 1024 * 1024,
        ),
        cost_estimate=cost,
    )(x2d)


def gelu_pallas(x: jax.Array, *, target_block_bytes: int = 4 * 1024 * 1024) -> jax.Array:
    """Apply exact GELU elementwise to a tensor of any shape via a Pallas TPU kernel."""
    orig_shape = x.shape
    n = x.size
    if n == 0:
        return x

    itemsize = jnp.dtype(x.dtype).itemsize
    sub = _sublane_multiple(x.dtype)
    x_flat = jnp.reshape(x, (-1,))

    # --- Path A: aligned sizes -> lane-dense (rows, C) slab, no padding, no copies. ---
    for cols in _LANE_CANDIDATES:
        if n % cols == 0 and (n // cols) % sub == 0:
            rows = n // cols
            tile_rows = max(sub, (target_block_bytes // (cols * itemsize)) // sub * sub)
            tile_rows = min(tile_rows, rows)
            # Keep >= 2 grid steps when possible so both v7x TensorCores get work.
            if tile_rows >= rows and rows >= 2 * sub:
                tile_rows = pl.cdiv(pl.cdiv(rows, 2), sub) * sub
            out2d = _gelu_2d(jnp.reshape(x_flat, (rows, cols)), tile_rows)
            return jnp.reshape(out2d, orig_shape)

    # --- Path B: lane-aligned but odd row count and small -> single full-array block. ---
    if n % 128 == 0 and n * itemsize <= 8 * 1024 * 1024:
        rows = n // 128
        out2d = _gelu_2d(jnp.reshape(x_flat, (rows, 128)), rows)
        return jnp.reshape(out2d, orig_shape)

    # --- Path C: fallback for unaligned sizes -> pad the tail (GELU(0) == 0, safe). ---
    rows = pl.cdiv(n, 128)
    rows_padded = pl.cdiv(rows, sub) * sub
    padded_n = rows_padded * 128
    xp = jnp.pad(x_flat, (0, padded_n - n))
    tile_rows = max(sub, (target_block_bytes // (128 * itemsize)) // sub * sub)
    tile_rows = min(tile_rows, rows_padded)
    out2d = _gelu_2d(jnp.reshape(xp, (rows_padded, 128)), tile_rows)
    out_flat = jnp.reshape(out2d, (-1,))[:n]
    return jnp.reshape(out_flat, orig_shape)


if __name__ == "__main__":
    key = jax.random.PRNGKey(0)

    # Primary test: NCHW tensor, hits the aligned (no-pad) path.
    x = jax.random.normal(key, (2, 4, 16, 16), dtype=jnp.float32)
    out = gelu_pallas(x)
    out = jax.block_until_ready(out)
    ref = jax.nn.gelu(x, approximate=False)
    assert out.shape == x.shape and out.dtype == x.dtype
    assert jnp.max(jnp.abs(out - ref)) < 1e-5

    # Secondary test: unaligned element count, exercises the padded fallback path.
    x2 = jax.random.normal(jax.random.PRNGKey(1), (3, 5, 7), dtype=jnp.float32)
    out2 = jax.block_until_ready(gelu_pallas(x2))
    ref2 = jax.nn.gelu(x2, approximate=False)
    assert out2.shape == x2.shape and out2.dtype == x2.dtype
    assert jnp.max(jnp.abs(out2 - ref2)) < 1e-5

    print("KERNEL_OK")
</pallas_src>

<mosaic_0001>
module attributes {stable_mosaic.version = 11 : i64} {
  func.func @_gelu_kernel(%arg0: i32, %arg1: memref<8x256xf32, #tpu.memory_space<vmem>>, %arg2: memref<8x256xf32, #tpu.memory_space<vmem>>) attributes {dimension_semantics = [#tpu.dimension_semantics<parallel>], iteration_bounds = array<i64: 1>, scalar_prefetch = 0 : i64, scratch_operands = 0 : i64, tpu.core_type = #tpu.core_type<tc>, window_params = [{transform_indices = @transform_0, window_bounds = array<i64: 8, 256>}, {transform_indices = @transform_1, window_bounds = array<i64: 8, 256>}]} {
    %c0 = arith.constant 0 : index
    %c0_0 = arith.constant 0 : index
    %0 = vector.load %arg1[%c0, %c0_0] : memref<8x256xf32, #tpu.memory_space<vmem>>, vector<8x256xf32>
    %cst = arith.constant 0.707106769 : f32
    %1 = vector.broadcast %cst : f32 to vector<8x256xf32>
    %2 = arith.mulf %0, %1 : vector<8x256xf32>
    %3 = math.erf %2 : vector<8x256xf32>
    %cst_1 = arith.constant 1.000000e+00 : f32
    %4 = vector.broadcast %cst_1 : f32 to vector<8x256xf32>
    %5 = arith.addf %4, %3 : vector<8x256xf32>
    %cst_2 = arith.constant 5.000000e-01 : f32
    %6 = vector.broadcast %cst_2 : f32 to vector<8x256xf32>
    %7 = arith.mulf %6, %5 : vector<8x256xf32>
    %8 = arith.mulf %0, %7 : vector<8x256xf32>
    %c0_3 = arith.constant 0 : index
    %c0_4 = arith.constant 0 : index
    %9 = vector.load %arg2[%c0_3, %c0_4] : memref<8x256xf32, #tpu.memory_space<vmem>>, vector<8x256xf32>
    tpu.vector_store %arg2[%c0_3, %c0_4], %8 {strides = array<i32>} : memref<8x256xf32, #tpu.memory_space<vmem>>, vector<8x256xf32>,
    return
  }
  func.func @transform_0(%arg0: i32) -> (i32, i32) {
    %c0_i32 = arith.constant 0 : i32
    %c0_i32_0 = arith.constant 0 : i32
    return %arg0, %c0_i32 : i32, i32
  }
  func.func @transform_1(%arg0: i32) -> (i32, i32) {
    %c0_i32 = arith.constant 0 : i32
    %c0_i32_0 = arith.constant 0 : i32
    return %arg0, %c0_i32 : i32, i32
  }
}

</mosaic_0001>

<bundles_post_ra>
// kernel: tpu_custom_call.1
= control target key start
LH: loop header
LB: loop body
LE: loop exit
PB: predicated region body
PF: predicated region fallthrough
CT: control target
= control target key end

     0   :  { %6 = vsyncpa [#allocation3], 0  ;;  %s140_s0 = inlined_call_operand.hbm [shape: f32[8,256], index: 0, kind: input, shape index: {}]   ;;  %s141_s1 = inlined_call_operand.hbm [shape: f32[8,256], index: 1, kind: output, shape index: {}]  }
   0x1   :  { %7 = vsyncpa [#allocation4], 0  ;;  %s104_s6 = smov [#allocation2]   ;;  %s56_s10 = scalar_lea.hbm %s140_s0, 256 }
   0x2   :  { %s14_s7 = sshll.u32 %s104_s6, 4  ;;  %p57_p0 = scmp.ne.s32.totalorder %s140_s0, %s56_s10  ;;  %s15_s7 = int_to_ptr.vmem [resolvable:$true] %s14_s7 }
   0x3   :  { %p60_p1 = scmp.lt.u32.totalorder %s56_s10, %s140_s0 }
   0x5   :  { %p62_p2 = pnand %p60_p1, %p57_p0 }
   0x7   :  { %65 = shalt.err (!%p62_p2)
}
   0x8   :  { %s66_s15 = scalar_lea.vmem %s15_s7, 256  ;;  %p71_p4 = scmp.lt.s32.totalorder %s15_s7, %s15_s7 }
   0x9   :  { %p67_p3 = scmp.ne.s32.totalorder %s15_s7, %s66_s15  ;;  %p72_p5 = scmp.lt.s32.totalorder %s66_s15, %s66_s15 }
   0xb   :  { %p73_p6 = por %p72_p5, %p71_p4 }
   0xd   :  { %p74_p7 = pnand %p73_p6, %p67_p3 }
   0xf   :  { %77 = shalt.err (!%p74_p7)
}
  0x10   :  { %17 = dma.hbm_to_vmem [thread:$0]  %s140_s0, 256, %s15_s7, [#allocation3]  }
  0x11   :  { %100 = dma.done.wait [#allocation3], 256  }
  0x12   :  { %101 = vsyncadd [#allocation3], 4294967040  ;;  %v21_v0 = vld [vmem:[#allocation2] sm:$0xff]  ;;  %v22_v1 = vld [vmem:[#allocation2 + $0x8] sm:$0xff]  ;;  %s105_s18 = smov [#allocation5]  }
  0x13   :  { %v23_v2 = vmul.f32 0.70710677, %v21_v0  ;;  %v24_v3 = vmul.f32 0.70710677, %v22_v1  ;;  %s41_s19 = sshll.u32 %s105_s18, 4  ;;  %s42_s19 = int_to_ptr.vmem [resolvable:$true] %s41_s19 }
  0x14   :  { %s78_s0 = scalar_lea.vmem %s42_s19, 256  ;;  %p83_p9 = scmp.lt.s32.totalorder %s42_s19, %s42_s19 }
  0x15   :  { %52 = verf.f32 %v23_v2  ;;  %p79_p8 = scmp.ne.s32.totalorder %s42_s19, %s78_s0  ;;  %p84_p10 = scmp.lt.s32.totalorder %s78_s0, %s78_s0 }
  0x16   :  { %54 = verf.f32 %v24_v3 }
  0x17   :  { %p85_p11 = por %p84_p10, %p83_p9 }
  0x19   :  { %p86_p12 = pnand %p85_p11, %p79_p8 }
  0x1f   :  { %v53_v4 = vpop.eup %52 }
  0x20   :  { %v55_v5 = vpop.eup %54  ;;  %v27_v6 = vadd.f32 1.0, %v53_v4 }
  0x21   :  { %v28_v7 = vadd.f32 1.0, %v55_v5 }
  0x22   :  { %v29_v8 = vmul.f32 0.5, %v27_v6 }
  0x23   :  { %v30_v9 = vmul.f32 0.5, %v28_v7 }
  0x24   :  { %v31_v10 = vmul.f32 %v29_v8, %v21_v0 }
  0x25   :  { %v32_v11 = vmul.f32 %v30_v9, %v22_v1 }
  0x26   :  { %33 = vst [vmem:[#allocation5] sm:$0xff] %v31_v10 }
  0x27   :  { %34 = vst [vmem:[#allocation5 + $0x8] sm:$0xff] %v32_v11 }
  0x28   :  { %89 = shalt.err (!%p86_p12)
}
  0x29   :  { %s90_s22 = scalar_lea.hbm %s141_s1, 256 }
  0x2a   :  { %p91_p13 = scmp.ne.s32.totalorder %s141_s1, %s90_s22  ;;  %p94_p0 = scmp.lt.u32.totalorder %s90_s22, %s141_s1 }
  0x2c   :  { %p96_p1 = pnand %p94_p0, %p91_p13 }
  0x2e   :  { %99 = shalt.err (!%p96_p1)
}
  0x2f   :  { %44 = dma.vmem_to_hbm [thread:$0]  %s42_s19, 256, %s141_s1, [#allocation4]  }
  0x30   :  { %102 = dma.done.wait [#allocation4], 256  }
  0x31   :  { %103 = vsyncadd [#allocation4], 4294967040 }
  0x32   :  { %48 = vsyncpa [#allocation3], 1 }
  0x33   :  { %49 = vsyncpa [#allocation4], 1 }

</bundles_post_ra>
